<compile_context>
chip_gen: v7x
topology: tpu7x:2x2x1
jax: 0.10.0
libtpu: 0.0.40
codegen_flags: <defaults>
</compile_context>

<pallas_src>
import math
from functools import partial

import jax
import jax.numpy as jnp
from jax.experimental import pallas as pl
from jax.experimental.pallas import tpu as pltpu


def _concat_relu_kernel(x_ref, o_ref, *, d, k):
    """x_ref: (rb, k*d) lane-dense tile; o_ref: (rb, 2*k*d) lane-dense tile.

    Input lanes [j*d:(j+1)*d] hold original row j of the folded group; the matching
    output lanes are [2*j*d : 2*j*d+d] = relu(x_j) and [2*j*d+d : 2*(j+1)*d] = relu(-x_j).
    """
    x = x_ref[...]
    if k == 1:
        y = jnp.concatenate([x, -x], axis=-1)
    else:
        parts = []
        for j in range(k):  # unrolled at trace time
            xj = x[:, j * d:(j + 1) * d]
            parts.append(xj)
            parts.append(-xj)
        y = jnp.concatenate(parts, axis=-1)
    # Single full-width (unmasked) store of the whole output block.
    o_ref[...] = jnp.maximum(y, jnp.zeros((), y.dtype))


def concat_relu(x, *, vmem_budget_bytes=12 * 1024 * 1024):
    """y = relu(concat([x, -x], axis=-1)), matching torch.cat((x, -x), -1) + F.relu."""
    orig_shape = x.shape
    d = int(orig_shape[-1])
    rows = 1
    for s in orig_shape[:-1]:
        rows *= int(s)
    itemsize = jnp.dtype(x.dtype).itemsize

    # Fold k rows into the lane axis so both blocks are >= 128 lanes wide.
    if d % 128 == 0:
        k = 1
    else:
        k = 128 // math.gcd(d, 128)          # smallest k with (k*d) % 128 == 0
        if k > rows or rows % k != 0:
            k = 1                            # fallback: un-folded (still correct)
    rows_f = rows // k
    c = k * d                                # input lane width seen by the kernel

    # Largest row tile whose double-buffered working set stays within budget
    # (conservatively account for lane padding to 128 in the narrow fallback).
    lanes_in = -(-c // 128) * 128
    lanes_out = -(-(2 * c) // 128) * 128
    bytes_per_row = (lanes_in + lanes_out) * itemsize
    max_rb = max(8, (vmem_budget_bytes // (2 * bytes_per_row)) // 8 * 8)
    rb = rows_f if rows_f <= max_rb else max_rb   # rb == rows_f (full) or multiple of 8
    grid = (pl.cdiv(rows_f, rb),)

    x2 = x.reshape(rows_f, c)                # free, contiguous reshape

    cost = pl.CostEstimate(
        flops=3 * rows * d,                  # negate + relu over 2*D outputs per row
        transcendentals=0,
        bytes_accessed=3 * rows * d * itemsize,   # read D, write 2*D per row
    )

    out2 = pl.pallas_call(
        partial(_concat_relu_kernel, d=d, k=k),
        out_shape=jax.ShapeDtypeStruct((rows_f, 2 * c), x.dtype),
        grid_spec=pltpu.PrefetchScalarGridSpec(
            num_scalar_prefetch=0,
            grid=grid,
            in_specs=[pl.BlockSpec((rb, c), lambda i: (i, 0))],
            out_specs=pl.BlockSpec((rb, 2 * c), lambda i: (i, 0)),
        ),
        compiler_params=pltpu.CompilerParams(
            dimension_semantics=("parallel",),      # lets v7x's 2 TCs split large inputs
            vmem_limit_bytes=32 * 1024 * 1024,      # explicit; >> 12 MiB working set
        ),
        cost_estimate=cost,
    )(x2)

    return out2.reshape(*orig_shape[:-1], 2 * d)


def _reference(x):
    return jnp.maximum(jnp.concatenate([x, -x], axis=-1), 0.0)


if __name__ == "__main__":
    key = jax.random.PRNGKey(0)
    # NCHW-style small activation; concat happens along W: (2,4,16,16) -> (2,4,16,32).
    x = jax.random.normal(key, (2, 4, 16, 16), dtype=jnp.float32)

    y = jax.block_until_ready(concat_relu(x))
    y_ref = _reference(x)
    assert y.shape == (2, 4, 16, 32), y.shape
    assert y.dtype == x.dtype
    assert jnp.array_equal(y, y_ref), "mismatch vs reference (folded path)"

    # Extra sanity check on a lane-aligned feature size (k == 1 fast path).
    x2 = jax.random.normal(jax.random.PRNGKey(1), (2, 8, 128), dtype=jnp.float32)
    y2 = jax.block_until_ready(concat_relu(x2))
    assert jnp.array_equal(y2, _reference(x2)), "mismatch vs reference (aligned path)"

    print("KERNEL_OK")
</pallas_src>

<mosaic_0001>
module attributes {stable_mosaic.version = 11 : i64} {
  func.func @_concat_relu_kernel(%arg0: i32, %arg1: memref<16x128xf32, #tpu.memory_space<vmem>>, %arg2: memref<16x256xf32, #tpu.memory_space<vmem>>) attributes {dimension_semantics = [#tpu.dimension_semantics<parallel>], iteration_bounds = array<i64: 1>, scalar_prefetch = 0 : i64, scratch_operands = 0 : i64, tpu.core_type = #tpu.core_type<tc>, window_params = [{transform_indices = @transform_0, window_bounds = array<i64: 16, 128>}, {transform_indices = @transform_1, window_bounds = array<i64: 16, 256>}]} {
    %c0 = arith.constant 0 : index
    %c0_0 = arith.constant 0 : index
    %0 = vector.load %arg1[%c0, %c0_0] : memref<16x128xf32, #tpu.memory_space<vmem>>, vector<16x128xf32>
    %1 = vector.extract_strided_slice %0 {offsets = [0, 0], sizes = [16, 16], strides = [1, 1]} : vector<16x128xf32> to vector<16x16xf32>
    %cst = arith.constant 0.000000e+00 : f32
    %2 = vector.broadcast %cst : f32 to vector<16x16xf32>
    %3 = arith.subf %2, %1 : vector<16x16xf32>
    %4 = vector.extract_strided_slice %0 {offsets = [0, 16], sizes = [16, 16], strides = [1, 1]} : vector<16x128xf32> to vector<16x16xf32>
    %cst_1 = arith.constant 0.000000e+00 : f32
    %5 = vector.broadcast %cst_1 : f32 to vector<16x16xf32>
    %6 = arith.subf %5, %4 : vector<16x16xf32>
    %7 = vector.extract_strided_slice %0 {offsets = [0, 32], sizes = [16, 16], strides = [1, 1]} : vector<16x128xf32> to vector<16x16xf32>
    %cst_2 = arith.constant 0.000000e+00 : f32
    %8 = vector.broadcast %cst_2 : f32 to vector<16x16xf32>
    %9 = arith.subf %8, %7 : vector<16x16xf32>
    %10 = vector.extract_strided_slice %0 {offsets = [0, 48], sizes = [16, 16], strides = [1, 1]} : vector<16x128xf32> to vector<16x16xf32>
    %cst_3 = arith.constant 0.000000e+00 : f32
    %11 = vector.broadcast %cst_3 : f32 to vector<16x16xf32>
    %12 = arith.subf %11, %10 : vector<16x16xf32>
    %13 = vector.extract_strided_slice %0 {offsets = [0, 64], sizes = [16, 16], strides = [1, 1]} : vector<16x128xf32> to vector<16x16xf32>
    %cst_4 = arith.constant 0.000000e+00 : f32
    %14 = vector.broadcast %cst_4 : f32 to vector<16x16xf32>
    %15 = arith.subf %14, %13 : vector<16x16xf32>
    %16 = vector.extract_strided_slice %0 {offsets = [0, 80], sizes = [16, 16], strides = [1, 1]} : vector<16x128xf32> to vector<16x16xf32>
    %cst_5 = arith.constant 0.000000e+00 : f32
    %17 = vector.broadcast %cst_5 : f32 to vector<16x16xf32>
    %18 = arith.subf %17, %16 : vector<16x16xf32>
    %19 = vector.extract_strided_slice %0 {offsets = [0, 96], sizes = [16, 16], strides = [1, 1]} : vector<16x128xf32> to vector<16x16xf32>
    %cst_6 = arith.constant 0.000000e+00 : f32
    %20 = vector.broadcast %cst_6 : f32 to vector<16x16xf32>
    %21 = arith.subf %20, %19 : vector<16x16xf32>
    %22 = vector.extract_strided_slice %0 {offsets = [0, 112], sizes = [16, 16], strides = [1, 1]} : vector<16x128xf32> to vector<16x16xf32>
    %cst_7 = arith.constant 0.000000e+00 : f32
    %23 = vector.broadcast %cst_7 : f32 to vector<16x16xf32>
    %24 = arith.subf %23, %22 : vector<16x16xf32>
    %25 = tpu.concatenate %1, %3, %4, %6, %7, %9, %10, %12, %13, %15, %16, %18, %19, %21, %22, %24 in 1 : vector<16x16xf32>, vector<16x16xf32>, vector<16x16xf32>, vector<16x16xf32>, vector<16x16xf32>, vector<16x16xf32>, vector<16x16xf32>, vector<16x16xf32>, vector<16x16xf32>, vector<16x16xf32>, vector<16x16xf32>, vector<16x16xf32>, vector<16x16xf32>, vector<16x16xf32>, vector<16x16xf32>, vector<16x16xf32> -> vector<16x256xf32>
    %cst_8 = arith.constant 0.000000e+00 : f32
    %26 = vector.broadcast %cst_8 : f32 to vector<16x256xf32>
    %27 = arith.maximumf %25, %26 : vector<16x256xf32>
    %c0_9 = arith.constant 0 : index
    %c0_10 = arith.constant 0 : index
    %28 = vector.load %arg2[%c0_9, %c0_10] : memref<16x256xf32, #tpu.memory_space<vmem>>, vector<16x256xf32>
    tpu.vector_store %arg2[%c0_9, %c0_10], %27 {strides = array<i32>} : memref<16x256xf32, #tpu.memory_space<vmem>>, vector<16x256xf32>,
    return
  }
  func.func @transform_0(%arg0: i32) -> (i32, i32) {
    %c0_i32 = arith.constant 0 : i32
    %c0_i32_0 = arith.constant 0 : i32
    return %arg0, %c0_i32 : i32, i32
  }
  func.func @transform_1(%arg0: i32) -> (i32, i32) {
    %c0_i32 = arith.constant 0 : i32
    %c0_i32_0 = arith.constant 0 : i32
    return %arg0, %c0_i32 : i32, i32
  }
}

</mosaic_0001>

<bundles_post_ra>
// kernel: tpu_custom_call.1
= control target key start
LH: loop header
LB: loop body
LE: loop exit
PB: predicated region body
PF: predicated region fallthrough
CT: control target
= control target key end

     0   :  { %6 = vsyncpa [#allocation3], 0  ;;  %s360_s0 = inlined_call_operand.hbm [shape: f32[16,128], index: 0, kind: input, shape index: {}]   ;;  %s361_s1 = inlined_call_operand.hbm [shape: f32[16,256], index: 1, kind: output, shape index: {}]  }
   0x1   :  { %7 = vsyncpa [#allocation4], 0  ;;  %s235_s6 = smov [#allocation2]   ;;  %s187_s10 = scalar_lea.hbm %s360_s0, 256 }
   0x2   :  { %s13_s7 = sshll.u32 %s235_s6, 4  ;;  %p188_p0 = scmp.ne.s32.totalorder %s360_s0, %s187_s10  ;;  %s14_s7 = int_to_ptr.vmem [resolvable:$true] %s13_s7 }
   0x3   :  { %p191_p1 = scmp.lt.u32.totalorder %s187_s10, %s360_s0 }
   0x5   :  { %p193_p2 = pnand %p191_p1, %p188_p0 }
   0x7   :  { %196 = shalt.err (!%p193_p2)
}
   0x8   :  { %s197_s15 = scalar_lea.vmem %s14_s7, 256  ;;  %p202_p4 = scmp.lt.s32.totalorder %s14_s7, %s14_s7 }
   0x9   :  { %p198_p3 = scmp.ne.s32.totalorder %s14_s7, %s197_s15  ;;  %p203_p5 = scmp.lt.s32.totalorder %s197_s15, %s197_s15 }
   0xb   :  { %p204_p6 = por %p203_p5, %p202_p4 }
   0xd   :  { %p205_p7 = pnand %p204_p6, %p198_p3 }
   0xf   :  { %208 = shalt.err (!%p205_p7)
}
  0x10   :  { %s236_s16 = smov 128   ;;  %s237_s17 = smov 8  }
  0x11   :  { %19 = dma.hbm_to_vmem [thread:$0]  %s360_s0, 256, %s14_s7, [#allocation3], %s236_s16, %s236_s16, %s237_s17  }
  0x12   :  { %231 = dma.done.wait [#allocation3], 256  }
  0x13   :  { %232 = vsyncadd [#allocation3], 4294967040  ;;  %v269_v0 = vld [vmem:[#allocation2] sm:$0xff]  ;;  %v271_v1 = vld [vmem:[#allocation2 + $0x8] sm:$0xff]  ;;  %s238_s20 = smov 64   ;;  %s239_s21 = smov 16  }
  0x14   :  { %73 = vrot.lane.b32.xlu1 %v269_v0, %s238_s20  ;;  %v276_v2 = vsub.f32 0.0, %v269_v0  ;;  %v281_v3 = vsub.f32 0.0, %v271_v1  ;;  %s240_s0 = smov 80   ;;  %s241_s22 = smov 32   ;;  %vm115_vm0 = vcmask 130048   ;;  %vm118_vm1 = vcmask 261120  }
  0x15   :  { %s242_s23 = smov 96   ;;  %s243_s24 = smov 48   ;;  %vm121_vm2 = vcmask 392192   ;;  %vm124_vm3 = vcmask 523264   ;;  %vm127_vm4 = vcmask 654336   ;;  %vm133_vm5 = vcmask 916480  }
  0x16   :  { %29 = vrot.lane.b32.xlu0 %v276_v2, %s239_s21  ;;  %s244_s25 = smov 112   ;;  %vm130_vm6 = vcmask 785408   ;;  %s245_s26 = smov [#allocation5]  }
  0x17   :  { %s163_s27 = sshll.u32 %s245_s26, 4  ;;  %s164_s27 = int_to_ptr.vmem [resolvable:$true] %s163_s27 }
  0x18   :  { %75 = vrot.lane.b32.xlu1 %v271_v1, %s238_s20  ;;  %s209_s28 = scalar_lea.vmem %s164_s27, 512  ;;  %p214_p9 = scmp.lt.s32.totalorder %s164_s27, %s164_s27 }
  0x19   :  { %p210_p8 = scmp.ne.s32.totalorder %s164_s27, %s209_s28  ;;  %p215_p10 = scmp.lt.s32.totalorder %s209_s28, %s209_s28 }
  0x1a   :  { %31 = vrot.lane.b32.xlu0 %v281_v3, %s239_s21 }
  0x1b   :  { %p216_p11 = por %p215_p10, %p214_p9 }
  0x1c   :  { %81 = vrot.lane.b32.xlu1 %v281_v3, %s240_s0 }
  0x1d   :  { %p217_p12 = pnand %p216_p11, %p210_p8 }
  0x1e   :  { %79 = vrot.lane.b32.xlu0 %v276_v2, %s240_s0 }
  0x20   :  { %39 = vrot.lane.b32.xlu1 %v271_v1, %s239_s21 }
  0x22   :  { %37 = vrot.lane.b32.xlu0 %v269_v0, %s239_s21 }
  0x24   :  { %87 = vrot.lane.b32.xlu1 %v271_v1, %s240_s0 }
  0x26   :  { %85 = vrot.lane.b32.xlu0 %v269_v0, %s240_s0 }
  0x28   :  { %45 = vrot.lane.b32.xlu1 %v281_v3, %s241_s22 }
  0x2a   :  { %43 = vrot.lane.b32.xlu0 %v276_v2, %s241_s22 }
  0x2c   :  { %93 = vrot.lane.b32.xlu1 %v281_v3, %s242_s23 }
  0x2e   :  { %91 = vrot.lane.b32.xlu0 %v276_v2, %s242_s23 }
  0x30   :  { %51 = vrot.lane.b32.xlu1 %v271_v1, %s241_s22 }
  0x32   :  { %49 = vrot.lane.b32.xlu0 %v269_v0, %s241_s22 }
  0x34   :  { %99 = vrot.lane.b32.xlu1 %v271_v1, %s242_s23 }
  0x36   :  { %97 = vrot.lane.b32.xlu0 %v269_v0, %s242_s23 }
  0x38   :  { %57 = vrot.lane.b32.xlu1 %v281_v3, %s243_s24 }
  0x3a   :  { %55 = vrot.lane.b32.xlu0 %v276_v2, %s243_s24 }
  0x3c   :  { %105 = vrot.lane.b32.xlu1 %v281_v3, %s244_s25 }
  0x3e   :  { %103 = vrot.lane.b32.xlu0 %v276_v2, %s244_s25 }
  0x40   :  { %63 = vrot.lane.b32.xlu1 %v271_v1, %s243_s24 }
  0x42   :  { %61 = vrot.lane.b32.xlu0 %v269_v0, %s243_s24 }
  0x44   :  { %111 = vrot.lane.b32.xlu1 %v271_v1, %s244_s25 }
  0x46   :  { %109 = vrot.lane.b32.xlu0 %v269_v0, %s244_s25 }
  0x48   :  { %69 = vrot.lane.b32.xlu1 %v281_v3, %s238_s20 }
  0x4a   :  { %67 = vrot.lane.b32.xlu0 %v276_v2, %s238_s20 }
  0x86   :  { %v74_v4 = vpop.permute.xlu1 %73 }
  0x88   :  { %v30_v5 = vpop.permute.xlu0 %29 }
  0x89   :  { %v116_v39 = vsel %vm115_vm0, %v269_v0, %v30_v5 }
  0x8a   :  { %v76_v6 = vpop.permute.xlu1 %75 }
  0x8c   :  { %v32_v7 = vpop.permute.xlu0 %31 }
  0x8d   :  { %v117_v32 = vsel %vm115_vm0, %v271_v1, %v32_v7 }
  0x8e   :  { %v82_v8 = vpop.permute.xlu1 %81 }
  0x8f   :  { %v137_v26 = vsel %vm115_vm0, %v76_v6, %v82_v8 }
  0x90   :  { %v80_v9 = vpop.permute.xlu0 %79 }
  0x91   :  { %v136_v29 = vsel %vm115_vm0, %v74_v4, %v80_v9 }
  0x92   :  { %v40_v10 = vpop.permute.xlu1 %39 }
  0x93   :  { %v120_v35 = vsel %vm118_vm1, %v117_v32, %v40_v10 }
  0x94   :  { %v38_v11 = vpop.permute.xlu0 %37 }
  0x95   :  { %v119_v43 = vsel %vm118_vm1, %v116_v39, %v38_v11 }
  0x96   :  { %v88_v12 = vpop.permute.xlu1 %87 }
  0x97   :  { %v139_v28 = vsel %vm118_vm1, %v137_v26, %v88_v12 }
  0x98   :  { %v86_v13 = vpop.permute.xlu0 %85 }
  0x99   :  { %v138_v33 = vsel %vm118_vm1, %v136_v29, %v86_v13 }
  0x9a   :  { %v46_v14 = vpop.permute.xlu1 %45 }
  0x9b   :  { %v123_v40 = vsel %vm121_vm2, %v120_v35, %v46_v14 }
  0x9c   :  { %v44_v15 = vpop.permute.xlu0 %43 }
  0x9d   :  { %v122_v48 = vsel %vm121_vm2, %v119_v43, %v44_v15 }
  0x9e   :  { %v94_v16 = vpop.permute.xlu1 %93 }
  0x9f   :  { %v141_v30 = vsel %vm121_vm2, %v139_v28, %v94_v16 }
  0xa0   :  { %v92_v17 = vpop.permute.xlu0 %91 }
  0xa1   :  { %v140_v36 = vsel %vm121_vm2, %v138_v33, %v92_v17 }
  0xa2   :  { %v52_v18 = vpop.permute.xlu1 %51 }
  0xa3   :  { %v126_v44 = vsel %vm124_vm3, %v123_v40, %v52_v18 }
  0xa4   :  { %v50_v19 = vpop.permute.xlu0 %49 }
  0xa5   :  { %v125_v52 = vsel %vm124_vm3, %v122_v48, %v50_v19 }
  0xa6   :  { %v100_v20 = vpop.permute.xlu1 %99 }
  0xa7   :  { %v143_v34 = vsel %vm124_vm3, %v141_v30, %v100_v20 }
  0xa8   :  { %v98_v21 = vpop.permute.xlu0 %97 }
  0xa9   :  { %v142_v41 = vsel %vm124_vm3, %v140_v36, %v98_v21 }
  0xaa   :  { %v58_v22 = vpop.permute.xlu1 %57 }
  0xab   :  { %v129_v49 = vsel %vm127_vm4, %v126_v44, %v58_v22 }
  0xac   :  { %v56_v23 = vpop.permute.xlu0 %55 }
  0xad   :  { %v128_v56 = vsel %vm127_vm4, %v125_v52, %v56_v23 }
  0xae   :  { %v106_v24 = vpop.permute.xlu1 %105 }
  0xaf   :  { %v145_v37 = vsel %vm127_vm4, %v143_v34, %v106_v24 }
  0xb0   :  { %v104_v25 = vpop.permute.xlu0 %103 }
  0xb1   :  { %v144_v45 = vsel %vm127_vm4, %v142_v41, %v104_v25 }
  0xb2   :  { %v64_v27 = vpop.permute.xlu1 %63 }
  0xb3   :  { %v132_v53 = vsel %vm130_vm6, %v129_v49, %v64_v27 }
  0xb4   :  { %v62_v31 = vpop.permute.xlu0 %61 }
  0xb5   :  { %v131_v59 = vsel %vm130_vm6, %v128_v56, %v62_v31 }
  0xb6   :  { %v112_v38 = vpop.permute.xlu1 %111 }
  0xb7   :  { %v147_v42 = vsel %vm130_vm6, %v145_v37, %v112_v38 }
  0xb8   :  { %v149_v46 = vsel %vm133_vm5, %v147_v42, %v281_v3  ;;  %v110_v47 = vpop.permute.xlu0 %109 }
  0xb9   :  { %v153_v50 = vmax.f32 %v149_v46, 0.0  ;;  %v146_v51 = vsel %vm130_vm6, %v144_v45, %v110_v47 }
  0xba   :  { %v148_v54 = vsel %vm133_vm5, %v146_v51, %v276_v2  ;;  %v70_v55 = vpop.permute.xlu1 %69 }
  0xbb   :  { %157 = vst [vmem:[#allocation5 + $0x18] sm:$0xff] %v153_v50  ;;  %v151_v57 = vmax.f32 %v148_v54, 0.0  ;;  %v135_v58 = vsel %vm133_vm5, %v132_v53, %v70_v55 }
  0xbc   :  { %v152_v60 = vmax.f32 %v135_v58, 0.0  ;;  %v68_v61 = vpop.permute.xlu0 %67 }
  0xbd   :  { %155 = vst [vmem:[#allocation5 + $0x8] sm:$0xff] %v151_v57  ;;  %v134_v62 = vsel %vm133_vm5, %v131_v59, %v68_v61 }
  0xbe   :  { %156 = vst [vmem:[#allocation5 + $0x10] sm:$0xff] %v152_v60  ;;  %v150_v63 = vmax.f32 %v134_v62, 0.0 }
  0xc0   :  { %154 = vst [vmem:[#allocation5] sm:$0xff] %v150_v63 }
  0xc1   :  { %220 = shalt.err (!%p217_p12)
}
  0xc2   :  { %s221_s2 = scalar_lea.hbm %s361_s1, 512 }
  0xc3   :  { %p222_p13 = scmp.ne.s32.totalorder %s361_s1, %s221_s2  ;;  %p225_p0 = scmp.lt.u32.totalorder %s221_s2, %s361_s1 }
  0xc5   :  { %p227_p1 = pnand %p225_p0, %p222_p13 }
  0xc7   :  { %230 = shalt.err (!%p227_p1)
}
  0xc8   :  { %s246_s7 = smov 256  }
  0xc9   :  { %169 = dma.vmem_to_hbm [thread:$0]  %s164_s27, 512, %s361_s1, [#allocation4], %s246_s7, %s246_s7, %s239_s21  }
  0xca   :  { %233 = dma.done.wait [#allocation4], 512  }
  0xcb   :  { %234 = vsyncadd [#allocation4], 4294966784 }
  0xcc   :  { %173 = vsyncpa [#allocation3], 1 }
  0xcd   :  { %174 = vsyncpa [#allocation4], 1 }

</bundles_post_ra>
